<compile_context>
chip_gen: v7x
topology: tpu7x:2x2x1
jax: 0.10.0
libtpu: 0.0.40
codegen_flags: <defaults>
</compile_context>

<pallas_src>
import jax
import jax.numpy as jnp
from jax.experimental import pallas as pl
from jax.experimental.pallas import tpu as pltpu

HIDDEN = 32          # small stand-in for bert-base hidden_size=768
NUM_HEADS = 8        # HIDDEN must be divisible by NUM_HEADS (32/8 = 4)
NUM_LABELS = 2
VOCAB = 64
EPS = 1e-5           # nn.LayerNorm default eps

# Row indices inside the packed [16, HIDDEN] vector-parameter block.
_ENC1_B, _ENC2_B, _ENC3_B = 0, 1, 2
_ATTN_BV, _ATTN_BO = 3, 4
_LN1_G, _LN1_B, _LN2_G, _LN2_B = 5, 6, 7, 8
_FFN_B2 = 9
_VEC_ROWS = 16       # padded to a sublane multiple


def _vmem_specs(n):
    return [pl.BlockSpec(memory_space=pltpu.MemorySpace.VMEM) for _ in range(n)]


def _layernorm(x, gamma, beta):
    mu = jnp.mean(x, axis=-1, keepdims=True)
    var = jnp.mean((x - mu) ** 2, axis=-1, keepdims=True)
    return (x - mu) * jax.lax.rsqrt(var + EPS) * gamma + beta


# ------------------- fused post-embedding forward kernel -------------------
def _fused_forward_kernel(h_ref, enc1_w_ref, enc2_w_ref, enc3_w_ref,
                          attn_wv_ref, attn_wo_ref, ffn_w1_ref, ffn_w2_ref,
                          cls_w_ref, vecp_ref, ffn_b1_ref, cls_b_ref, o_ref):
    h = h_ref[...]                                  # [B, S, H] f32
    H = h.shape[-1]

    vp = vecp_ref[...]                              # [16, H] packed bias/LN rows
    enc1_b = vp[_ENC1_B:_ENC1_B + 1, :]
    enc2_b = vp[_ENC2_B:_ENC2_B + 1, :]
    enc3_b = vp[_ENC3_B:_ENC3_B + 1, :]
    attn_bv = vp[_ATTN_BV:_ATTN_BV + 1, :]
    attn_bo = vp[_ATTN_BO:_ATTN_BO + 1, :]
    ln1_g = vp[_LN1_G:_LN1_G + 1, :]
    ln1_b = vp[_LN1_B:_LN1_B + 1, :]
    ln2_g = vp[_LN2_G:_LN2_G + 1, :]
    ln2_b = vp[_LN2_B:_LN2_B + 1, :]
    ffn_b2 = vp[_FFN_B2:_FFN_B2 + 1, :]

    # HybridPooling (done once: pooled1 == pooled2 in the reference, and
    # encoder1(pooled1) is discarded there, so it is skipped entirely).
    cls_tok = h[:, 0, :]                            # [B, H]
    avg = jnp.mean(h, axis=1)                       # [B, H]
    mx = jnp.max(h, axis=1)                         # [B, H]

    # encoder1 on concat([cls, avg, max]) expressed as a sum of three matmuls
    # against the row-blocks of enc1_w — identical math, no lane-axis concat.
    x = (jnp.dot(cls_tok, enc1_w_ref[0:H, :], preferred_element_type=jnp.float32)
         + jnp.dot(avg, enc1_w_ref[H:2 * H, :], preferred_element_type=jnp.float32)
         + jnp.dot(mx, enc1_w_ref[2 * H:3 * H, :], preferred_element_type=jnp.float32)
         + enc1_b)                                  # [B, H]

    # encoder2, encoder3
    x = jnp.dot(x, enc2_w_ref[...], preferred_element_type=jnp.float32) + enc2_b
    x = jnp.dot(x, enc3_w_ref[...], preferred_element_type=jnp.float32) + enc3_b

    # ModifiedTransformerBlock on the length-1 sequence (x.unsqueeze(1)).
    # Softmax over a single key is exactly 1 for every head (eval mode, no
    # key-padding mask), so attn_output = out_proj(v_proj(x)); the q/k
    # projections cancel mathematically.  Only valid for seq len 1.
    v = jnp.dot(x, attn_wv_ref[...], preferred_element_type=jnp.float32) + attn_bv
    attn = jnp.dot(v, attn_wo_ref[...], preferred_element_type=jnp.float32) + attn_bo
    xh = _layernorm(x + attn, ln1_g, ln1_b)         # norm1(x + attn)

    f = jnp.dot(xh, ffn_w1_ref[...], preferred_element_type=jnp.float32) + ffn_b1_ref[...]
    f = jnp.maximum(f, 0.0)                         # ReLU
    f = jnp.dot(f, ffn_w2_ref[...], preferred_element_type=jnp.float32) + ffn_b2
    xo = _layernorm(xh + f, ln2_g, ln2_b)           # norm2(x + ffn)

    # classifier(x[:, 0])
    o_ref[...] = (jnp.dot(xo, cls_w_ref[...], preferred_element_type=jnp.float32)
                  + cls_b_ref[...])                 # [B, num_labels]


def fused_post_bert_forward(hidden_states, p):
    B = hidden_states.shape[0]
    args = (hidden_states,
            p["enc1_w"], p["enc2_w"], p["enc3_w"],
            p["attn_wv"], p["attn_wo"], p["ffn_w1"], p["ffn_w2"],
            p["cls_w"], p["vecp"], p["ffn_b1"], p["cls_b"])
    return pl.pallas_call(
        _fused_forward_kernel,
        out_shape=jax.ShapeDtypeStruct((B, NUM_LABELS), jnp.float32),
        in_specs=_vmem_specs(len(args)),
        out_specs=pl.BlockSpec(memory_space=pltpu.MemorySpace.VMEM),
    )(*args)


# ----------------------- Parameters + full forward -----------------------
def init_params(key, hidden=HIDDEN, num_labels=NUM_LABELS, vocab=VOCAB):
    ks = jax.random.split(key, 9)
    s = 0.02

    def w(k, shape):
        return (s * jax.random.normal(k, shape)).astype(jnp.float32)

    # Packed [16, H] block: biases init to 0, LayerNorm gammas to 1.
    vecp = jnp.zeros((_VEC_ROWS, hidden), jnp.float32)
    vecp = vecp.at[_LN1_G].set(1.0)
    vecp = vecp.at[_LN2_G].set(1.0)

    return {
        "emb": w(ks[0], (vocab, hidden)),
        "enc1_w": w(ks[1], (3 * hidden, hidden)),
        "enc2_w": w(ks[2], (hidden, hidden)),
        "enc3_w": w(ks[3], (hidden, hidden)),
        # nn.MultiheadAttention: for a seq-len-1 input only v/out projections matter.
        "attn_wv": w(ks[4], (hidden, hidden)),
        "attn_wo": w(ks[5], (hidden, hidden)),
        "ffn_w1": w(ks[6], (hidden, 4 * hidden)),
        "ffn_w2": w(ks[7], (4 * hidden, hidden)),
        "cls_w": w(ks[8], (hidden, num_labels)),
        "vecp": vecp,                                   # packed biases / LN params
        "ffn_b1": jnp.zeros((1, 4 * hidden), jnp.float32),
        "cls_b": jnp.zeros((1, num_labels), jnp.float32),
    }


def fine_tuned_bert_forward(params, input_ids, attention_mask=None, token_type_ids=None):
    # TODO(synk): BertModel.from_pretrained (12-layer pretrained encoder) has no
    # in-script equivalent; it is replaced by a deterministic embedding-lookup
    # stand-in producing last_hidden_state. attention_mask / token_type_ids are
    # accepted but unused by that stand-in (the reference also pools unmasked).
    hidden_states = jnp.take(params["emb"], input_ids, axis=0)      # [B, S, H]

    # Entire post-embedding forward (pool -> enc1 -> enc2 -> enc3 ->
    # transformer block -> classifier) runs in one fused Pallas kernel.
    return fused_post_bert_forward(hidden_states, params)           # [B, num_labels]


if __name__ == "__main__":
    key = jax.random.PRNGKey(0)
    pkey, dkey = jax.random.split(key)
    params = init_params(pkey)

    B, S = 2, 8
    input_ids = jax.random.randint(dkey, (B, S), 0, VOCAB, dtype=jnp.int32)
    attention_mask = jnp.ones((B, S), jnp.int32)

    logits = fine_tuned_bert_forward(params, input_ids, attention_mask)
    jax.block_until_ready(logits)
    assert logits.shape == (B, NUM_LABELS)
    print("KERNEL_OK")
</pallas_src>

<mosaic_0001>
module attributes {stable_mosaic.version = 11 : i64} {
  func.func @_fused_forward_kernel(%arg0: memref<2x8x32xf32, #tpu.memory_space<vmem>>, %arg1: memref<96x32xf32, #tpu.memory_space<vmem>>, %arg2: memref<32x32xf32, #tpu.memory_space<vmem>>, %arg3: memref<32x32xf32, #tpu.memory_space<vmem>>, %arg4: memref<32x32xf32, #tpu.memory_space<vmem>>, %arg5: memref<32x32xf32, #tpu.memory_space<vmem>>, %arg6: memref<32x128xf32, #tpu.memory_space<vmem>>, %arg7: memref<128x32xf32, #tpu.memory_space<vmem>>, %arg8: memref<32x2xf32, #tpu.memory_space<vmem>>, %arg9: memref<16x32xf32, #tpu.memory_space<vmem>>, %arg10: memref<1x128xf32, #tpu.memory_space<vmem>>, %arg11: memref<1x2xf32, #tpu.memory_space<vmem>>, %arg12: memref<2x2xf32, #tpu.memory_space<vmem>>) attributes {dimension_semantics = [], scalar_prefetch = 0 : i64, scratch_operands = 0 : i64, tpu.core_type = #tpu.core_type<tc>} {
    %c0 = arith.constant 0 : index
    %c0_0 = arith.constant 0 : index
    %c0_1 = arith.constant 0 : index
    %0 = vector.load %arg0[%c0, %c0_0, %c0_1] : memref<2x8x32xf32, #tpu.memory_space<vmem>>, vector<2x8x32xf32>
    %c0_2 = arith.constant 0 : index
    %c0_3 = arith.constant 0 : index
    %1 = vector.load %arg9[%c0_2, %c0_3] : memref<16x32xf32, #tpu.memory_space<vmem>>, vector<16x32xf32>
    %2 = vector.extract_strided_slice %1 {offsets = [0, 0], sizes = [1, 32], strides = [1, 1]} : vector<16x32xf32> to vector<1x32xf32>
    %3 = vector.extract_strided_slice %1 {offsets = [1, 0], sizes = [1, 32], strides = [1, 1]} : vector<16x32xf32> to vector<1x32xf32>
    %4 = vector.extract_strided_slice %1 {offsets = [2, 0], sizes = [1, 32], strides = [1, 1]} : vector<16x32xf32> to vector<1x32xf32>
    %5 = vector.extract_strided_slice %1 {offsets = [3, 0], sizes = [1, 32], strides = [1, 1]} : vector<16x32xf32> to vector<1x32xf32>
    %6 = vector.extract_strided_slice %1 {offsets = [4, 0], sizes = [1, 32], strides = [1, 1]} : vector<16x32xf32> to vector<1x32xf32>
    %7 = vector.extract_strided_slice %1 {offsets = [5, 0], sizes = [1, 32], strides = [1, 1]} : vector<16x32xf32> to vector<1x32xf32>
    %8 = vector.extract_strided_slice %1 {offsets = [6, 0], sizes = [1, 32], strides = [1, 1]} : vector<16x32xf32> to vector<1x32xf32>
    %9 = vector.extract_strided_slice %1 {offsets = [7, 0], sizes = [1, 32], strides = [1, 1]} : vector<16x32xf32> to vector<1x32xf32>
    %10 = vector.extract_strided_slice %1 {offsets = [8, 0], sizes = [1, 32], strides = [1, 1]} : vector<16x32xf32> to vector<1x32xf32>
    %11 = vector.extract_strided_slice %1 {offsets = [9, 0], sizes = [1, 32], strides = [1, 1]} : vector<16x32xf32> to vector<1x32xf32>
    %12 = vector.extract_strided_slice %0 {offsets = [0, 0, 0], sizes = [2, 1, 32], strides = [1, 1, 1]} : vector<2x8x32xf32> to vector<2x1x32xf32>
    %13 = vector.shape_cast %12 : vector<2x1x32xf32> to vector<2x32xf32>
    %cst = arith.constant dense<0.000000e+00> : vector<2x32xf32>
    %14 = vector.multi_reduction <add>, %0, %cst [1] : vector<2x8x32xf32> to vector<2x32xf32>
    %cst_4 = arith.constant 8.000000e+00 : f32
    %15 = vector.broadcast %cst_4 : f32 to vector<2x32xf32>
    %16 = arith.divf %14, %15 : vector<2x32xf32>
    %cst_5 = arith.constant dense<0xFF800000> : vector<2x32xf32>
    %17 = vector.multi_reduction <maximumf>, %0, %cst_5 [1] : vector<2x8x32xf32> to vector<2x32xf32>
    %c0_6 = arith.constant 0 : index
    %c0_7 = arith.constant 0 : index
    %18 = vector.load %arg1[%c0_6, %c0_7] : memref<96x32xf32, #tpu.memory_space<vmem>>, vector<32x32xf32>
    %cst_8 = arith.constant dense<0.000000e+00> : vector<2x32xf32>
    %19 = tpu.matmul %13, %18, %cst_8 {dimension_numbers = #tpu.dot_dimension_numbers<[1], [0], [0], [1], [0, 0, 1, 1], [], []>} : vector<2x32xf32>, vector<32x32xf32>, vector<2x32xf32> -> vector<2x32xf32>
    %c32 = arith.constant 32 : index
    %c0_9 = arith.constant 0 : index
    %20 = vector.load %arg1[%c32, %c0_9] : memref<96x32xf32, #tpu.memory_space<vmem>>, vector<32x32xf32>
    %cst_10 = arith.constant dense<0.000000e+00> : vector<2x32xf32>
    %21 = tpu.matmul %16, %20, %cst_10 {dimension_numbers = #tpu.dot_dimension_numbers<[1], [0], [0], [1], [0, 0, 1, 1], [], []>} : vector<2x32xf32>, vector<32x32xf32>, vector<2x32xf32> -> vector<2x32xf32>
    %22 = arith.addf %19, %21 : vector<2x32xf32>
    %c64 = arith.constant 64 : index
    %c0_11 = arith.constant 0 : index
    %23 = vector.load %arg1[%c64, %c0_11] : memref<96x32xf32, #tpu.memory_space<vmem>>, vector<32x32xf32>
    %cst_12 = arith.constant dense<0.000000e+00> : vector<2x32xf32>
    %24 = tpu.matmul %17, %23, %cst_12 {dimension_numbers = #tpu.dot_dimension_numbers<[1], [0], [0], [1], [0, 0, 1, 1], [], []>} : vector<2x32xf32>, vector<32x32xf32>, vector<2x32xf32> -> vector<2x32xf32>
    %25 = arith.addf %22, %24 : vector<2x32xf32>
    %26 = vector.broadcast %2 : vector<1x32xf32> to vector<2x32xf32>
    %27 = arith.addf %25, %26 : vector<2x32xf32>
    %c0_13 = arith.constant 0 : index
    %c0_14 = arith.constant 0 : index
    %28 = vector.load %arg2[%c0_13, %c0_14] : memref<32x32xf32, #tpu.memory_space<vmem>>, vector<32x32xf32>
    %cst_15 = arith.constant dense<0.000000e+00> : vector<2x32xf32>
    %29 = tpu.matmul %27, %28, %cst_15 {dimension_numbers = #tpu.dot_dimension_numbers<[1], [0], [0], [1], [0, 0, 1, 1], [], []>} : vector<2x32xf32>, vector<32x32xf32>, vector<2x32xf32> -> vector<2x32xf32>
    %30 = vector.broadcast %3 : vector<1x32xf32> to vector<2x32xf32>
    %31 = arith.addf %29, %30 : vector<2x32xf32>
    %c0_16 = arith.constant 0 : index
    %c0_17 = arith.constant 0 : index
    %32 = vector.load %arg3[%c0_16, %c0_17] : memref<32x32xf32, #tpu.memory_space<vmem>>, vector<32x32xf32>
    %cst_18 = arith.constant dense<0.000000e+00> : vector<2x32xf32>
    %33 = tpu.matmul %31, %32, %cst_18 {dimension_numbers = #tpu.dot_dimension_numbers<[1], [0], [0], [1], [0, 0, 1, 1], [], []>} : vector<2x32xf32>, vector<32x32xf32>, vector<2x32xf32> -> vector<2x32xf32>
    %34 = vector.broadcast %4 : vector<1x32xf32> to vector<2x32xf32>
    %35 = arith.addf %33, %34 : vector<2x32xf32>
    %c0_19 = arith.constant 0 : index
    %c0_20 = arith.constant 0 : index
    %36 = vector.load %arg4[%c0_19, %c0_20] : memref<32x32xf32, #tpu.memory_space<vmem>>, vector<32x32xf32>
    %cst_21 = arith.constant dense<0.000000e+00> : vector<2x32xf32>
    %37 = tpu.matmul %35, %36, %cst_21 {dimension_numbers = #tpu.dot_dimension_numbers<[1], [0], [0], [1], [0, 0, 1, 1], [], []>} : vector<2x32xf32>, vector<32x32xf32>, vector<2x32xf32> -> vector<2x32xf32>
    %38 = vector.broadcast %5 : vector<1x32xf32> to vector<2x32xf32>
    %39 = arith.addf %37, %38 : vector<2x32xf32>
    %c0_22 = arith.constant 0 : index
    %c0_23 = arith.constant 0 : index
    %40 = vector.load %arg5[%c0_22, %c0_23] : memref<32x32xf32, #tpu.memory_space<vmem>>, vector<32x32xf32>
    %cst_24 = arith.constant dense<0.000000e+00> : vector<2x32xf32>
    %41 = tpu.matmul %39, %40, %cst_24 {dimension_numbers = #tpu.dot_dimension_numbers<[1], [0], [0], [1], [0, 0, 1, 1], [], []>} : vector<2x32xf32>, vector<32x32xf32>, vector<2x32xf32> -> vector<2x32xf32>
    %42 = vector.broadcast %6 : vector<1x32xf32> to vector<2x32xf32>
    %43 = arith.addf %41, %42 : vector<2x32xf32>
    %44 = arith.addf %35, %43 : vector<2x32xf32>
    %cst_25 = arith.constant dense<0.000000e+00> : vector<2xf32>
    %45 = vector.multi_reduction <add>, %44, %cst_25 [1] : vector<2x32xf32> to vector<2xf32>
    %46 = vector.shape_cast %45 : vector<2xf32> to vector<2x1xf32>
    %cst_26 = arith.constant 3.200000e+01 : f32
    %47 = vector.broadcast %cst_26 : f32 to vector<2x1xf32>
    %48 = arith.divf %46, %47 : vector<2x1xf32>
    %49 = vector.broadcast %48 : vector<2x1xf32> to vector<2x32xf32>
    %50 = arith.subf %44, %49 : vector<2x32xf32>
    %51 = arith.mulf %50, %50 : vector<2x32xf32>
    %cst_27 = arith.constant dense<0.000000e+00> : vector<2xf32>
    %52 = vector.multi_reduction <add>, %51, %cst_27 [1] : vector<2x32xf32> to vector<2xf32>
    %53 = vector.shape_cast %52 : vector<2xf32> to vector<2x1xf32>
    %cst_28 = arith.constant 3.200000e+01 : f32
    %54 = vector.broadcast %cst_28 : f32 to vector<2x1xf32>
    %55 = arith.divf %53, %54 : vector<2x1xf32>
    %56 = vector.broadcast %48 : vector<2x1xf32> to vector<2x32xf32>
    %57 = arith.subf %44, %56 : vector<2x32xf32>
    %cst_29 = arith.constant 9.99999974E-6 : f32
    %58 = vector.broadcast %cst_29 : f32 to vector<2x1xf32>
    %59 = arith.addf %55, %58 : vector<2x1xf32>
    %60 = math.rsqrt %59 : vector<2x1xf32>
    %61 = vector.broadcast %60 : vector<2x1xf32> to vector<2x32xf32>
    %62 = arith.mulf %57, %61 : vector<2x32xf32>
    %63 = vector.broadcast %7 : vector<1x32xf32> to vector<2x32xf32>
    %64 = arith.mulf %62, %63 : vector<2x32xf32>
    %65 = vector.broadcast %8 : vector<1x32xf32> to vector<2x32xf32>
    %66 = arith.addf %64, %65 : vector<2x32xf32>
    %c0_30 = arith.constant 0 : index
    %c0_31 = arith.constant 0 : index
    %67 = vector.load %arg6[%c0_30, %c0_31] : memref<32x128xf32, #tpu.memory_space<vmem>>, vector<32x128xf32>
    %cst_32 = arith.constant dense<0.000000e+00> : vector<2x128xf32>
    %68 = tpu.matmul %66, %67, %cst_32 {dimension_numbers = #tpu.dot_dimension_numbers<[1], [0], [0], [1], [0, 0, 1, 1], [], []>} : vector<2x32xf32>, vector<32x128xf32>, vector<2x128xf32> -> vector<2x128xf32>
    %c0_33 = arith.constant 0 : index
    %c0_34 = arith.constant 0 : index
    %69 = vector.load %arg10[%c0_33, %c0_34] : memref<1x128xf32, #tpu.memory_space<vmem>>, vector<1x128xf32>
    %70 = vector.broadcast %69 : vector<1x128xf32> to vector<2x128xf32>
    %71 = arith.addf %68, %70 : vector<2x128xf32>
    %cst_35 = arith.constant 0.000000e+00 : f32
    %72 = vector.broadcast %cst_35 : f32 to vector<2x128xf32>
    %73 = arith.maximumf %71, %72 : vector<2x128xf32>
    %c0_36 = arith.constant 0 : index
    %c0_37 = arith.constant 0 : index
    %74 = vector.load %arg7[%c0_36, %c0_37] : memref<128x32xf32, #tpu.memory_space<vmem>>, vector<128x32xf32>
    %cst_38 = arith.constant dense<0.000000e+00> : vector<2x32xf32>
    %75 = tpu.matmul %73, %74, %cst_38 {dimension_numbers = #tpu.dot_dimension_numbers<[1], [0], [0], [1], [0, 0, 1, 1], [], []>} : vector<2x128xf32>, vector<128x32xf32>, vector<2x32xf32> -> vector<2x32xf32>
    %76 = vector.broadcast %11 : vector<1x32xf32> to vector<2x32xf32>
    %77 = arith.addf %75, %76 : vector<2x32xf32>
    %78 = arith.addf %66, %77 : vector<2x32xf32>
    %cst_39 = arith.constant dense<0.000000e+00> : vector<2xf32>
    %79 = vector.multi_reduction <add>, %78, %cst_39 [1] : vector<2x32xf32> to vector<2xf32>
    %80 = vector.shape_cast %79 : vector<2xf32> to vector<2x1xf32>
    %cst_40 = arith.constant 3.200000e+01 : f32
    %81 = vector.broadcast %cst_40 : f32 to vector<2x1xf32>
    %82 = arith.divf %80, %81 : vector<2x1xf32>
    %83 = vector.broadcast %82 : vector<2x1xf32> to vector<2x32xf32>
    %84 = arith.subf %78, %83 : vector<2x32xf32>
    %85 = arith.mulf %84, %84 : vector<2x32xf32>
    %cst_41 = arith.constant dense<0.000000e+00> : vector<2xf32>
    %86 = vector.multi_reduction <add>, %85, %cst_41 [1] : vector<2x32xf32> to vector<2xf32>
    %87 = vector.shape_cast %86 : vector<2xf32> to vector<2x1xf32>
    %cst_42 = arith.constant 3.200000e+01 : f32
    %88 = vector.broadcast %cst_42 : f32 to vector<2x1xf32>
    %89 = arith.divf %87, %88 : vector<2x1xf32>
    %90 = vector.broadcast %82 : vector<2x1xf32> to vector<2x32xf32>
    %91 = arith.subf %78, %90 : vector<2x32xf32>
    %cst_43 = arith.constant 9.99999974E-6 : f32
    %92 = vector.broadcast %cst_43 : f32 to vector<2x1xf32>
    %93 = arith.addf %89, %92 : vector<2x1xf32>
    %94 = math.rsqrt %93 : vector<2x1xf32>
    %95 = vector.broadcast %94 : vector<2x1xf32> to vector<2x32xf32>
    %96 = arith.mulf %91, %95 : vector<2x32xf32>
    %97 = vector.broadcast %9 : vector<1x32xf32> to vector<2x32xf32>
    %98 = arith.mulf %96, %97 : vector<2x32xf32>
    %99 = vector.broadcast %10 : vector<1x32xf32> to vector<2x32xf32>
    %100 = arith.addf %98, %99 : vector<2x32xf32>
    %c0_44 = arith.constant 0 : index
    %c0_45 = arith.constant 0 : index
    %101 = vector.load %arg8[%c0_44, %c0_45] : memref<32x2xf32, #tpu.memory_space<vmem>>, vector<32x2xf32>
    %cst_46 = arith.constant dense<0.000000e+00> : vector<2x2xf32>
    %102 = tpu.matmul %100, %101, %cst_46 {dimension_numbers = #tpu.dot_dimension_numbers<[1], [0], [0], [1], [0, 0, 1, 1], [], []>} : vector<2x32xf32>, vector<32x2xf32>, vector<2x2xf32> -> vector<2x2xf32>
    %c0_47 = arith.constant 0 : index
    %c0_48 = arith.constant 0 : index
    %103 = vector.load %arg11[%c0_47, %c0_48] : memref<1x2xf32, #tpu.memory_space<vmem>>, vector<1x2xf32>
    %104 = vector.broadcast %103 : vector<1x2xf32> to vector<2x2xf32>
    %105 = arith.addf %102, %104 : vector<2x2xf32>
    %c0_49 = arith.constant 0 : index
    %c0_50 = arith.constant 0 : index
    %106 = vector.load %arg12[%c0_49, %c0_50] : memref<2x2xf32, #tpu.memory_space<vmem>>, vector<2x2xf32>
    tpu.vector_store %arg12[%c0_49, %c0_50], %105 {strides = array<i32>} : memref<2x2xf32, #tpu.memory_space<vmem>>, vector<2x2xf32>,
    return
  }
}

</mosaic_0001>

<bundles_post_ra>
// kernel: tpu_custom_call.1
= control target key start
LH: loop header
LB: loop body
LE: loop exit
PB: predicated region body
PF: predicated region fallthrough
CT: control target
= control target key end

     0   :  { %v1289_v3 = vmov 0.0|0.0   ;;  %vm1290_vm0 = vmmov 0   ;;  %v1291_v6 = vmov 0.0   ;;  %vm46_vm1 = vcmask 261120   ;;  %s1648_s0 = inlined_call_operand.vmem [shape: f32[2,8,32], index: 0, kind: input, shape index: {}]   ;;  %s1649_s1 = inlined_call_operand.vmem [shape: f32[96,32], index: 1, kind: input, shape index: {}]   ;;  %s1650_s2 = inlined_call_operand.vmem [shape: f32[32,32], index: 2, kind: input, shape index: {}]   ;;  %s1651_s3 = inlined_call_operand.vmem [shape: f32[32,32], index: 3, kind: input, shape index: {}]   ;;  %s1652_s4 = inlined_call_operand.vmem [shape: f32[32,32], index: 4, kind: input, shape index: {}]   ;;  %s1653_s5 = inlined_call_operand.vmem [shape: f32[32,32], index: 5, kind: input, shape index: {}]   ;;  %s1654_s6 = inlined_call_operand.vmem [shape: f32[32,128], index: 6, kind: input, shape index: {}]   ;;  %s1655_s7 = inlined_call_operand.vmem [shape: f32[128,32], index: 7, kind: input, shape index: {}]   ;;  %s1656_s8 = inlined_call_operand.vmem [shape: f32[32,2], index: 8, kind: input, shape index: {}]   ;;  %s1657_s9 = inlined_call_operand.vmem [shape: f32[16,32], index: 9, kind: input, shape index: {}]   ;;  %s1658_s10 = inlined_call_operand.vmem [shape: f32[1,128], index: 10, kind: input, shape index: {}]   ;;  %s1659_s11 = inlined_call_operand.vmem [shape: f32[1,2], index: 11, kind: input, shape index: {}]   ;;  %s1660_s12 = inlined_call_operand.hbm [shape: f32[2,2], index: 12, kind: output, shape index: {}]  }
   0x1   :  { %v82_v0 = vld [vmem:[%s1649_s1 + $0x20] sm:$0xff]  ;;  %v83_v1 = vld [vmem:[%s1649_s1 + $0x28] sm:$0xff]  ;;  %v84_v2 = vld [vmem:[%s1649_s1 + $0x30] sm:$0xff]  ;;  %1179 = vmatprep.subr.bf16.mxu1 %v1289_v3  ;;  %1053 = vmatprep.mubr.msk.f32.mxu1 %vm1290_vm0, %v1291_v6 }
   0x2   :  { %v1180_v4 = vpack.c.bf16 %v83_v1, %v82_v0  ;;  %v85_v5 = vld [vmem:[%s1649_s1 + $0x38] sm:$0xff]  ;;  %v1376_v7 = vld [vmem:[%s1648_s0] sm:$0xff]  ;;  %v1381_v8 = vld [vmem:[%s1648_s0 + $0x8] sm:$0xff]  ;;  %1191 = vmatprep.subr.bf16.mxu0 %v1289_v3  ;;  %1075 = vmatprep.mubr.msk.f32.mxu0 %vm1290_vm0, %v1291_v6 }
   0x3   :  { %v47_v9 = vsel %vm46_vm1, %v1376_v7, 0.0  ;;  %v54_v10 = vsel %vm46_vm1, %v1381_v8, 0.0  ;;  %v238_v11 = vld [vmem:[%s1649_s1 + $0x40] sm:$0xff]  ;;  %v1183_v12 = vpack.c.bf16 %v85_v5, %v84_v2  ;;  %v239_v15 = vld [vmem:[%s1649_s1 + $0x48] sm:$0xff]  ;;  %v64_v16 = vsel %vm46_vm1, %v1376_v7, -inf  ;;  %v240_v18 = vld [vmem:[%s1649_s1 + $0x50] sm:$0xff] }
   0x4   :  { %1181 = vmatpush3.bf16.msra.mxu1 %v1180_v4  ;;  %v48_v13 = vrot.slane %v47_v9, 4  ;;  %v55_v14 = vrot.slane %v54_v10, 4  ;;  %v1192_v17 = vpack.c.bf16 %v239_v15, %v238_v11  ;;  %v241_v19 = vld [vmem:[%s1649_s1 + $0x58] sm:$0xff]  ;;  %v65_v20 = vrot.slane %v64_v16, 4 }
   0x5   :  { %1182 = vmatprep.subr.bf16.mxu1 %v1289_v3 }
   0x6   :  { %17 = vsyncpa [#allocation3], 0  ;;  %v49_v21 = vadd.f32 %v48_v13, %v47_v9  ;;  %v56_v22 = vadd.f32 %v55_v14, %v54_v10  ;;  %v71_v23 = vsel %vm46_vm1, %v1381_v8, -inf  ;;  %1193 = vmatpush3.bf16.msra.mxu0 %v1192_v17  ;;  %v1195_v24 = vpack.c.bf16 %v241_v19, %v240_v18  ;;  %v78_v37 = vld [vmem:[%s1649_s1] sm:$0xff]  ;;  %v79_v38 = vld [vmem:[%s1649_s1 + $0x8] sm:$0xff] }
   0x7   :  { %v66_v25 = vmax.f32 %v64_v16, %v65_v20  ;;  %v72_v26 = vrot.slane %v71_v23, 4  ;;  %1194 = vmatprep.subr.bf16.mxu0 %v1289_v3  ;;  %vm88_vm2 = vcmask 1041409   ;;  %v1186_v47 = vpack.c.bf16 %v79_v38, %v78_v37  ;;  %v80_v48 = vld [vmem:[%s1649_s1 + $0x10] sm:$0xff]  ;;  %v81_v49 = vld [vmem:[%s1649_s1 + $0x18] sm:$0xff]  ;;  %v323_v56 = vld [vmem:[%s1650_s2] sm:$0xff] }
   0x8   :  { %1184 = vmatpush3.bf16.msra.mxu1 %v1183_v12  ;;  %v50_v27 = vrot.slane %v49_v21, 2  ;;  %v57_v28 = vrot.slane %v56_v22, 2  ;;  %v1189_v53 = vpack.c.bf16 %v81_v49, %v80_v48  ;;  %v164_v54 = vrot.slane %v1381_v8, 7  ;;  %v324_v57 = vld [vmem:[%s1650_s2 + $0x8] sm:$0xff]  ;;  %v325_v59 = vld [vmem:[%s1650_s2 + $0x10] sm:$0xff]  ;;  %v326_v60 = vld [vmem:[%s1650_s2 + $0x18] sm:$0xff] }
   0x9   :  { %1185 = vmatprep.subr.bf16.mxu1 %v1289_v3  ;;  %v67_v29 = vrot.slane %v66_v25, 2  ;;  %v73_v30 = vmax.f32 %v71_v23, %v72_v26  ;;  %v1198_v58 = vpack.c.bf16 %v324_v57, %v323_v56  ;;  %v1201_v61 = vpack.c.bf16 %v326_v60, %v325_v59  ;;  %v404_v62 = vld [vmem:[%s1651_s3] sm:$0xff]  ;;  %v405_v63 = vld [vmem:[%s1651_s3 + $0x8] sm:$0xff]  ;;  %v406_v17 = vld [vmem:[%s1651_s3 + $0x10] sm:$0xff] }
   0xa   :  { %v51_v31 = vadd.f32 %v50_v27, %v49_v21  ;;  %v58_v32 = vadd.f32 %v57_v28, %v56_v22  ;;  %1196 = vmatpush3.bf16.msra.mxu0 %v1195_v24  ;;  %v165_v55 = vsel %vm88_vm2, %v164_v54, %v1376_v7  ;;  %v1204_v0 = vpack.c.bf16 %v405_v63, %v404_v62  ;;  %v1465_v10 = vld [vmem:[%s1657_s9] sm:$0xff]  ;;  %v407_v18 = vld [vmem:[%s1651_s3 + $0x18] sm:$0xff]  ;;  %v486_v21 = vld [vmem:[%s1652_s4 + $0x8] sm:$0xff] }
   0xb   :  { %v68_v33 = vmax.f32 %v66_v25, %v67_v29  ;;  %v74_v34 = vrot.slane %v73_v30, 2  ;;  %1203 = vmatprep.subr.bf16.mxu0 %v1289_v3  ;;  %v318_v1 = vlaneseq  ;;  %v1207_v19 = vpack.c.bf16 %v407_v18, %v406_v17  ;;  %v485_v20 = vld [vmem:[%s1652_s4] sm:$0xff]  ;;  %v487_v28 = vld [vmem:[%s1652_s4 + $0x10] sm:$0xff]  ;;  %v488_v29 = vld [vmem:[%s1652_s4 + $0x18] sm:$0xff] }
   0xc   :  { %v52_v35 = vrot.slane %v51_v31, 1  ;;  %v59_v36 = vrot.slane %v58_v32, 1  ;;  %v1210_v22 = vpack.c.bf16 %v486_v21, %v485_v20  ;;  %vm648_vm3 = vcmask 254976   ;;  %v673_v59 = vld [vmem:[%s1654_s6] sm:$0xff]  ;;  %v674_v60 = vld [vmem:[%s1654_s6 + $0x8] sm:$0xff]  ;;  %v675_v62 = vld [vmem:[%s1654_s6 + $0x10] sm:$0xff] }
   0xd   :  { %v69_v39 = vrot.slane %v68_v33, 1  ;;  %v75_v40 = vmax.f32 %v73_v30, %v74_v34  ;;  %v1459_v5 = vshrl.u32 %v318_v1, 7  ;;  %v1213_v30 = vpack.c.bf16 %v488_v29, %v487_v28  ;;  %v676_v63 = vld [vmem:[%s1654_s6 + $0x18] sm:$0xff]  ;;  %v758_v1 = vld [vmem:[%s1655_s7] sm:$0xff]  ;;  %v768_v21 = vld [vmem:[%s1655_s7 + $0x50] sm:$0xff] }
   0xe   :  { %v53_v41 = vadd.f32 %v52_v35, %v51_v31  ;;  %v60_v42 = vadd.f32 %v59_v36, %v58_v32  ;;  %v566_v31 = vld [vmem:[%s1653_s5] sm:$0xff]  ;;  %v567_v32 = vld [vmem:[%s1653_s5 + $0x8] sm:$0xff]  ;;  %vm956_vm4 = vcmask 9216  }
   0xf   :  { %v70_v43 = vmax.f32 %v68_v33, %v69_v39  ;;  %v76_v44 = vrot.slane %v75_v40, 1  ;;  %v320_v9 = vsub.s32 0, %v1459_v5  ;;  %v329_v23 = vsub.s32 1, %v1459_v5  ;;  %v568_v39 = vld [vmem:[%s1653_s5 + $0x10] sm:$0xff]  ;;  %v766_v18 = vld [vmem:[%s1655_s7 + $0x40] sm:$0xff] }
  0x10   :  { %v62_v45 = vmul.f32 0.125, %v53_v41  ;;  %v63_v46 = vmul.f32 0.125, %v60_v42  ;;  %v1216_v33 = vpack.c.bf16 %v567_v32, %v566_v31  ;;  %v410_v34 = vsub.s32 2, %v1459_v5 }
  0x11   :  { %v77_v50 = vmax.f32 %v75_v40, %v76_v44  ;;  %v321_v14 = vrot.slane %v1465_v10, %v320_v9  ;;  %v330_v24 = vrot.slane %v1465_v10, %v329_v23  ;;  %v569_v40 = vld [vmem:[%s1653_s5 + $0x18] sm:$0xff]  ;;  %v491_v42 = vsub.s32 3, %v1459_v5  ;;  %s1292_s5 = smov [#allocation2]  }
  0x12   :  { %v89_v51 = vsel %vm88_vm2, %v63_v46, %v62_v45  ;;  %v411_v35 = vrot.slane %v1465_v10, %v410_v34  ;;  %v1219_v41 = vpack.c.bf16 %v569_v40, %v568_v39  ;;  %v665_v31 = vsub.s32 5, %v1459_v5  ;;  %v772_v39 = vld [vmem:[%s1655_s7 + $0x70] sm:$0xff]  ;;  %v773_v40 = vld [vmem:[%s1655_s7 + $0x78] sm:$0xff]  ;;  %s964_s21 = sshll.u32 %s1292_s5, 4  ;;  %s965_s21 = int_to_ptr.vmem [resolvable:$true] %s964_s21 }
  0x13   :  { %1054 = vmatmul.mubr.msk.f32.vlgmr.msra.gmra.mrb[0].mxu1 %vm46_vm1, %v89_v51  ;;  %v244_v52 = vsel %vm88_vm2, %v77_v50, %v70_v43  ;;  %v492_v43 = vrot.slane %v1465_v10, %v491_v42  ;;  %v670_v32 = vsub.s32 6, %v1459_v5  ;;  %v979_v42 = vld [vmem:[%s1658_s10] ss:$0 sm:$0xff]  ;;  %s1265_s2 = scalar_lea.vmem %s965_s21, 32  ;;  %p1270_p1 = scmp.lt.s32.totalorder %s965_s21, %s965_s21 }
  0x14   :  { %1187 = vmatpush3.bf16.msra.mxu1 %v1186_v47  ;;  %1064 = vmatprep.mubr.msk.f32.mxu1 %vm1290_vm0, %v1291_v6  ;;  %v572_v47 = vsub.s32 4, %v1459_v5  ;;  %p1266_p0 = scmp.ne.s32.totalorder %s965_s21, %s1265_s2  ;;  %p1271_p2 = scmp.lt.s32.totalorder %s1265_s2, %s1265_s2 }
  0x15   :  { %1188 = vmatprep.subr.bf16.mxu1 %v1289_v3  ;;  %1076 = vmatmul.mubr.msk.f32.vlgmr.msra.gmra.mrb[0].mxu0 %vm46_vm1, %v244_v52 }
  0x16   :  { %1097 = vmatprep.mubr.msk.f32.mxu0 %vm1290_vm0, %v1291_v6  ;;  %1205 = vmatpush3.bf16.msra.mxu0 %v1204_v0  ;;  %v573_v48 = vrot.slane %v1465_v10, %v572_v47  ;;  %v1225_v0 = vpack.c.bf16 %v676_v63, %v675_v62  ;;  %p1272_p3 = por %p1271_p2, %p1270_p1 }
  0x17   :  { %1206 = vmatprep.subr.bf16.mxu0 %v1289_v3 }
  0x18   :  { %1190 = vmatpush3.bf16.msra.mxu1 %v1189_v53  ;;  %p1273_p4 = pnand %p1272_p3, %p1266_p0 }
  0x19   :  { %1197 = vmatprep.subr.bf16.mxu1 %v1289_v3 }
  0x1a   :  { %1208 = vmatpush3.bf16.msra.mxu0 %v1207_v19  ;;  %v767_v19 = vld [vmem:[%s1655_s7 + $0x48] sm:$0xff] }
  0x1b   :  { %1065 = vmatmul.mubr.msk.f32.vlgmr.msra.gmra.mrb[2].mxu1 %vm46_vm1, %v165_v55  ;;  %1215 = vmatprep.subr.bf16.mxu0 %v1289_v3  ;;  %v1240_v20 = vpack.c.bf16 %v767_v19, %v766_v18 }
  0x1c   :  { %1086 = vmatprep.mubr.msk.f32.mxu1 %vm1290_vm0, %v1291_v6  ;;  %1199 = vmatpush3.bf16.msra.mxu1 %v1198_v58 }
  0x1d   :  { %1200 = vmatprep.subr.bf16.mxu1 %v1289_v3 }
  0x20   :  { %1202 = vmatpush3.bf16.msra.mxu1 %v1201_v61  ;;  %v1222_v61 = vpack.c.bf16 %v674_v60, %v673_v59  ;;  %v874_v60 = vld [vmem:[%s1656_s8 + $0x10] sm:$0xff] }
  0x21   :  { %1209 = vmatprep.subr.bf16.mxu1 %v1289_v3 }
  0xe6   :  { %v158_v2 = vpop.f32.mrb[0].mxu1 }
  0xe7   :  { %v1055_v4 = vpop.f32.mrb[1].mxu1 }
  0xe8   :  { %v313_v7 = vpop.f32.mrb[0].mxu0  ;;  %v760_v4 = vld [vmem:[%s1655_s7 + $0x10] sm:$0xff] }
  0xe9   :  { %v1077_v8 = vpop.f32.mrb[1].mxu0 }
  0xea   :  { %v761_v8 = vld [vmem:[%s1655_s7 + $0x18] sm:$0xff] }
  0xee   :  { %v234_v11 = vpop.f32.mrb[2].mxu1 }
  0xef   :  { %v235_v12 = vadd.f32 %v234_v11, %v158_v2  ;;  %v1066_v13 = vpop.f32.mrb[3].mxu1  ;;  %v759_v2 = vld [vmem:[%s1655_s7 + $0x8] sm:$0xff]  ;;  %v1231_v11 = vpack.c.bf16 %v761_v8, %v760_v4 }
  0xf0   :  { %v763_v13 = vld [vmem:[%s1655_s7 + $0x28] sm:$0xff] }
  0xf1   :  { %v317_v15 = vadd.f32 %v313_v7, %v235_v12  ;;  %v1228_v7 = vpack.c.bf16 %v759_v2, %v758_v1  ;;  %v762_v12 = vld [vmem:[%s1655_s7 + $0x20] sm:$0xff]  ;;  %v864_v2 = vsub.s32 7, %v1459_v5 }
  0xf3   :  { %v322_v16 = vadd.f32 %v321_v14, %v317_v15  ;;  %v1234_v14 = vpack.c.bf16 %v763_v13, %v762_v12  ;;  %v764_v15 = vld [vmem:[%s1655_s7 + $0x30] sm:$0xff]  ;;  %v865_v4 = vrot.slane %v1465_v10, %v864_v2  ;;  %v981_v13 = vld [vmem:[%s1659_s11] ss:$0 sm:$0xff] }
  0xf5   :  { %1087 = vmatmul.mubr.msk.f32.vlgmr.msra.gmra.mrb[4].mxu1 %vm46_vm1, %v322_v16  ;;  %v765_v16 = vld [vmem:[%s1655_s7 + $0x38] sm:$0xff] }
  0xf6   :  { %1108 = vmatprep.mubr.msk.f32.mxu1 %vm1290_vm0, %v1291_v6  ;;  %1211 = vmatpush3.bf16.msra.mxu1 %v1210_v22  ;;  %v1237_v17 = vpack.c.bf16 %v765_v16, %v764_v15  ;;  %v769_v22 = vld [vmem:[%s1655_s7 + $0x58] sm:$0xff] }
  0xf7   :  { %1212 = vmatprep.subr.bf16.mxu1 %v1289_v3 }
  0xfa   :  { %1214 = vmatpush3.bf16.msra.mxu1 %v1213_v30 }
  0xfb   :  { %1221 = vmatprep.subr.bf16.mxu1 %v1289_v3 }
 0x1c8   :  { %v400_v25 = vpop.f32.mrb[4].mxu1 }
 0x1c9   :  { %v401_v26 = vadd.f32 %v400_v25, %v330_v24  ;;  %v1088_v27 = vpop.f32.mrb[5].mxu1  ;;  %v1243_v24 = vpack.c.bf16 %v769_v22, %v768_v21  ;;  %v770_v25 = vld [vmem:[%s1655_s7 + $0x60] sm:$0xff] }
 0x1cb   :  { %1098 = vmatmul.mubr.msk.f32.vlgmr.msra.gmra.mrb[2].mxu0 %vm46_vm1, %v401_v26  ;;  %v771_v26 = vld [vmem:[%s1655_s7 + $0x68] sm:$0xff] }
 0x1cc   :  { %1119 = vmatprep.mubr.msk.f32.mxu0 %vm1290_vm0, %v1291_v6  ;;  %1217 = vmatpush3.bf16.msra.mxu0 %v1216_v33  ;;  %v1246_v27 = vpack.c.bf16 %v771_v26, %v770_v25  ;;  %v666_v33 = vrot.slane %v1465_v10, %v665_v31 }
 0x1cd   :  { %1218 = vmatprep.subr.bf16.mxu0 %v1289_v3 }
 0x1d0   :  { %1220 = vmatpush3.bf16.msra.mxu0 %v1219_v41  ;;  %v1249_v41 = vpack.c.bf16 %v773_v40, %v772_v39 }
 0x1d1   :  { %1227 = vmatprep.subr.bf16.mxu0 %v1289_v3 }
 0x29e   :  { %v481_v36 = vpop.f32.mrb[2].mxu0 }
 0x29f   :  { %v482_v37 = vadd.f32 %v481_v36, %v411_v35  ;;  %v1099_v38 = vpop.f32.mrb[3].mxu0  ;;  %v671_v36 = vrot.slane %v1465_v10, %v670_v32 }
 0x2a1   :  { %1109 = vmatmul.mubr.msk.f32.vlgmr.msra.gmra.mrb[6].mxu1 %vm46_vm1, %v482_v37 }
 0x2a2   :  { %1130 = vmatprep.mubr.msk.f32.mxu1 %vm1290_vm0, %v1291_v6  ;;  %1223 = vmatpush3.bf16.msra.mxu1 %v1222_v61  ;;  %v875_v61 = vld [vmem:[%s1656_s8 + $0x18] sm:$0xff] }
 0x2a3   :  { %1224 = vmatprep.subr.bf16.mxu1 %v1289_v3  ;;  %v1255_v62 = vpack.c.bf16 %v875_v61, %v874_v60 }
 0x2a6   :  { %1226 = vmatpush3.bf16.msra.mxu1 %v1225_v0 }
 0x2a7   :  { %1251 = vmatprep.subr.bf16.mxu1 %v1289_v3 }
 0x374   :  { %v562_v44 = vpop.f32.mrb[6].mxu1 }
 0x375   :  { %v563_v45 = vadd.f32 %v562_v44, %v492_v43  ;;  %v1110_v46 = vpop.f32.mrb[7].mxu1 }
 0x377   :  { %1120 = vmatmul.mubr.msk.f32.vlgmr.msra.gmra.mrb[4].mxu0 %vm46_vm1, %v563_v45 }
 0x378   :  { %1165 = vmatprep.mubr.msk.f32.mxu0 %vm1290_vm0, %v1291_v6  ;;  %1229 = vmatpush3.bf16.msra.mxu0 %v1228_v7 }
 0x379   :  { %1230 = vmatprep.subr.bf16.mxu0 %v1289_v3 }
 0x37c   :  { %1232 = vmatpush3.bf16.msra.mxu0 %v1231_v11 }
 0x37d   :  { %1233 = vmatprep.subr.bf16.mxu0 %v1289_v3 }
 0x380   :  { %1235 = vmatpush3.bf16.msra.mxu0 %v1234_v14 }
 0x381   :  { %1236 = vmatprep.subr.bf16.mxu0 %v1289_v3 }
 0x384   :  { %1238 = vmatpush3.bf16.msra.mxu0 %v1237_v17 }
 0x385   :  { %1239 = vmatprep.subr.bf16.mxu0 %v1289_v3 }
 0x388   :  { %1241 = vmatpush3.bf16.msra.mxu0 %v1240_v20 }
 0x389   :  { %1242 = vmatprep.subr.bf16.mxu0 %v1289_v3 }
 0x38c   :  { %1244 = vmatpush3.bf16.msra.mxu0 %v1243_v24 }
 0x38d   :  { %1245 = vmatprep.subr.bf16.mxu0 %v1289_v3 }
 0x390   :  { %1247 = vmatpush3.bf16.msra.mxu0 %v1246_v27 }
 0x391   :  { %1248 = vmatprep.subr.bf16.mxu0 %v1289_v3 }
 0x394   :  { %1250 = vmatpush3.bf16.msra.mxu0 %v1249_v41 }
 0x44a   :  { %v643_v49 = vpop.f32.mrb[4].mxu0 }
 0x44b   :  { %v644_v50 = vadd.f32 %v643_v49, %v573_v48  ;;  %v1121_v51 = vpop.f32.mrb[5].mxu0 }
 0x44d   :  { %v647_v52 = vadd.f32 %v644_v50, %v482_v37 }
 0x44f   :  { %v649_v53 = vsel %vm648_vm3, %v647_v52, 0.0 }
 0x450   :  { %650 = vadd.xlane.f32.xlu0 %v649_v53 }
 0x4dd   :  { %v651_v54 = vpop.xlane.xlu0 %650 }
 0x4de   :  { %v653_v55 = vmul.f32 0.03125, %v651_v54 }
 0x4e0   :  { %v654_v56 = vsub.f32 %v647_v52, %v653_v55 }
 0x4e2   :  { %v655_v57 = vmul.f32 %v654_v56, %v654_v56 }
 0x4e4   :  { %v656_v58 = vsel %vm648_vm3, %v655_v57, 0.0 }
 0x4e5   :  { %657 = vadd.xlane.f32.xlu0 %v656_v58  ;;  %v872_v58 = vld [vmem:[%s1656_s8] sm:$0xff] }
 0x572   :  { %v658_v28 = vpop.xlane.xlu0 %657 }
 0x573   :  { %v659_v29 = vmul.f32 0.03125, %v658_v28 }
 0x575   :  { %v660_v30 = vadd.f32 1e-05, %v659_v29 }
 0x577   :  { %1261 = vrsqrt.f32 %v660_v30 }
 0x581   :  { %v1262_v34 = vpop.eup %1261 }
 0x582   :  { %v662_v35 = vmul.f32 %v1262_v34, %v654_v56 }
 0x584   :  { %v667_v37 = vmul.f32 %v666_v33, %v662_v35 }
 0x586   :  { %v672_v38 = vadd.f32 %v671_v36, %v667_v37 }
 0x588   :  { %1131 = vmatmul.mubr.msk.f32.vlgmr.msra.gmra.mrb[8].mxu1 %vm46_vm1, %v672_v38 }
 0x589   :  { %1176 = vmatprep.mubr.msk.f32.mxu1 %vm1290_vm0, %v1291_v6  ;;  %v45_v6 = vld [vmem:[%s1657_s9 + $0x8] sm:$0xff] }
 0x58a   :  { %v777_v47 = vrot.slane %v45_v6, %v329_v23  ;;  %v873_v23 = vld [vmem:[%s1656_s8 + $0x8] sm:$0xff] }
 0x58b   :  { %v1252_v59 = vpack.c.bf16 %v873_v23, %v872_v58 }
 0x58d   :  { %1253 = vmatpush3.bf16.msra.mxu1 %v1252_v59 }
 0x58e   :  { %1254 = vmatprep.subr.bf16.mxu1 %v1289_v3  ;;  %v870_v3 = vrot.slane %v45_v6, %v320_v9 }
 0x591   :  { %1256 = vmatpush3.bf16.msra.mxu1 %v1255_v62 }
 0x65b   :  { %v753_v43 = vpop.f32.mrb[8].mxu1 }
 0x65c   :  { %v754_v44 = vadd.f32 %v979_v42, %v753_v43  ;;  %v1132_v45 = vpop.f32.mrb[9].mxu1 }
 0x65e   :  { %v757_v46 = vmax.f32 %v754_v44, 0.0 }
 0x660   :  { %1166 = vmatmul.mubr.f32.vlgmr.msra.gmra.mrb[6].mxu0 %v757_v46 }
 0x733   :  { %v844_v48 = vpop.f32.mrb[6].mxu0 }
 0x734   :  { %v845_v49 = vadd.f32 %v844_v48, %v777_v47  ;;  %v1167_v50 = vpop.f32.mrb[7].mxu0 }
 0x736   :  { %v848_v51 = vadd.f32 %v845_v49, %v672_v38 }
 0x738   :  { %v849_v52 = vsel %vm648_vm3, %v848_v51, 0.0 }
 0x739   :  { %850 = vadd.xlane.f32.xlu1 %v849_v52 }
 0x7c6   :  { %v851_v53 = vpop.xlane.xlu1 %850 }
 0x7c7   :  { %v852_v54 = vmul.f32 0.03125, %v851_v53 }
 0x7c9   :  { %v853_v55 = vsub.f32 %v848_v51, %v852_v54 }
 0x7cb   :  { %v854_v56 = vmul.f32 %v853_v55, %v853_v55 }
 0x7cd   :  { %v855_v57 = vsel %vm648_vm3, %v854_v56, 0.0 }
 0x7ce   :  { %856 = vadd.xlane.f32.xlu1 %v855_v57 }
 0x85b   :  { %v857_v63 = vpop.xlane.xlu1 %856 }
 0x85c   :  { %v858_v0 = vmul.f32 0.03125, %v857_v63 }
 0x85e   :  { %v859_v1 = vadd.f32 1e-05, %v858_v0 }
 0x860   :  { %1263 = vrsqrt.f32 %v859_v1 }
 0x86a   :  { %v1264_v7 = vpop.eup %1263 }
 0x86b   :  { %v861_v8 = vmul.f32 %v1264_v7, %v853_v55 }
 0x86d   :  { %v866_v11 = vmul.f32 %v865_v4, %v861_v8 }
 0x86f   :  { %v871_v12 = vadd.f32 %v870_v3, %v866_v11 }
 0x871   :  { %1177 = vmatmul.mubr.msk.f32.vlgmr.msra.gmra.mrb[10].mxu1 %vm46_vm1, %v871_v12 }
 0x944   :  { %v952_v14 = vpop.f32.mrb[10].mxu1 }
 0x945   :  { %v953_v15 = vadd.f32 %v981_v13, %v952_v14  ;;  %v1178_v16 = vpop.f32.mrb[11].mxu1 }
 0x947   :  { %957 = vst.msk [vmem:[#allocation2] sm:$0x3] %vm956_vm4, %v953_v15 }
 0x948   :  { %1276 = shalt.err (!%p1273_p4)
}
 0x949   :  { %s1277_s24 = scalar_lea.hbm %s1660_s12, 32 }
 0x94a   :  { %p1278_p5 = scmp.ne.s32.totalorder %s1660_s12, %s1277_s24  ;;  %p1281_p6 = scmp.lt.u32.totalorder %s1277_s24, %s1660_s12 }
 0x94c   :  { %p1283_p7 = pnand %p1281_p6, %p1278_p5 }
 0x94e   :  { %1286 = shalt.err (!%p1283_p7)
}
 0x94f   :  { %967 = dma.vmem_to_hbm [thread:$0]  %s965_s21, 32, %s1660_s12, [#allocation3]  }
 0x950   :  { %1287 = dma.done.wait [#allocation3], 32  }
 0x951   :  { %1288 = vsyncadd [#allocation3], 4294967264 }
 0x952   :  { %971 = vsyncpa [#allocation3], 1 }

</bundles_post_ra>
